<compile_context>
chip_gen: v7x
topology: tpu7x:2x2x1
jax: 0.10.0
libtpu: 0.0.40
codegen_flags: <defaults>
</compile_context>

<pallas_src>
import jax
import jax.numpy as jnp
from jax.experimental import pallas as pl
from jax.experimental.pallas import tpu as pltpu


def _pred_kernel(x_ref, w_ref, b_ref, o_ref):
    # x_ref: VMEM (BN, C, RT, LW)   w_ref: SMEM (C,)   b_ref: SMEM (1,)
    # o_ref: VMEM (BN, RT, LW)
    C = x_ref.shape[1]
    # Unrolled channel reduction: SMEM scalar * vector FMAs on the VPU.
    # Per-channel Ref loads keep live values to ~2 block-slabs (acc + current
    # channel) instead of materializing the full (BN, C, RT, LW) block.
    acc = x_ref[:, 0] * w_ref[0]
    for c in range(1, C):  # C is static -> fully unrolled
        acc = acc + x_ref[:, c] * w_ref[c]
    o_ref[...] = jax.nn.sigmoid(acc + b_ref[0]).astype(o_ref.dtype)


def _choose_tiling(N, C, HW, dtype_bytes=4, vmem_block_budget=16 << 20):
    """Pick (lane_w, rows, row_tile, batch_tile) for the spatial layout.

    Blocks are sized so a double-buffered input block stays under
    `vmem_block_budget` (safe inside the 32 MiB scoped VMEM limit on
    v5e/v6e/v7x once the much smaller output double buffer is added).
    """
    c_pad = -(-C // 8) * 8  # sublane padding of the channel dim inside VMEM

    divisors = [d for d in (4096, 2048, 1024, 512, 256, 128) if HW % d == 0]
    if not divisors:
        # HW not a multiple of 128: single full-HW block per image (full-dim
        # blocks are always legal); fold the whole batch in if it fits.
        bn = N if N * c_pad * HW * dtype_bytes * 2 <= vmem_block_budget else 1
        return HW, 1, 1, bn

    # Largest lane width whose minimal (8-row, double-buffered) block fits.
    lane_w = divisors[-1]
    for d in divisors:
        if c_pad * d * 8 * dtype_bytes * 2 <= vmem_block_budget:
            lane_w = d
            break
    rows = HW // lane_w

    # Tiny-problem fast path: one grid step, whole problem in one block.
    if N * c_pad * HW * dtype_bytes * 2 <= vmem_block_budget:
        return lane_w, rows, rows, N

    # Generic path: one image per batch step, tile the spatial rows.
    bytes_per_row = c_pad * lane_w * dtype_bytes * 2  # x2: double buffering
    if rows % 8 == 0:
        row_tile = 8
        while (rows % (row_tile * 2) == 0
               and (row_tile * 2) * bytes_per_row <= vmem_block_budget):
            row_tile *= 2
    else:
        row_tile = rows  # full-dim block (always legal)
    return lane_w, rows, row_tile, 1


def pred_forward(x_nchw, weight, bias):
    """x_nchw: (N, C, H, W) f32; weight: (C,) or (1,C,1,1); bias: () or (1,).

    Returns (N, 1, H, W) f32 = sigmoid(conv1x1(x)).
    """
    N, C, H, W = x_nchw.shape
    HW = H * W
    lane_w, rows, row_tile, bn = _choose_tiling(N, C, HW)

    x4 = x_nchw.reshape(N, C, rows, lane_w)      # pure view, no data movement
    w = weight.reshape(C).astype(jnp.float32)
    b = bias.reshape(1).astype(jnp.float32)

    grid = (N // bn, rows // row_tile)

    out = pl.pallas_call(
        _pred_kernel,
        out_shape=jax.ShapeDtypeStruct((N, rows, lane_w), jnp.float32),
        grid_spec=pltpu.PrefetchScalarGridSpec(
            num_scalar_prefetch=0,
            grid=grid,
            in_specs=[
                # streamed activation tile (double-buffered by Pallas)
                pl.BlockSpec((bn, C, row_tile, lane_w),
                             lambda n, r: (n, 0, r, 0)),
                # weight + bias live in SMEM for the whole kernel (no per-step
                # DMA, no nearly-empty (C,1) vreg)
                pl.BlockSpec(memory_space=pltpu.SMEM),
                pl.BlockSpec(memory_space=pltpu.SMEM),
            ],
            out_specs=pl.BlockSpec((bn, row_tile, lane_w),
                                   lambda n, r: (n, r, 0)),
        ),
        compiler_params=pltpu.CompilerParams(
            dimension_semantics=("parallel", "parallel"),
            vmem_limit_bytes=32 * 1024 * 1024,
        ),
    )(x4, w, b)

    return out.reshape(N, 1, H, W)


def _reference(x_nchw, weight, bias):
    # plain-JAX reference of Conv2d(in_c, 1, kernel_size=1) + sigmoid
    y = jnp.einsum("nchw,c->nhw", x_nchw, weight.reshape(-1)) + bias.reshape(())
    return jax.nn.sigmoid(y)[:, None, :, :]


if __name__ == "__main__":
    key = jax.random.PRNGKey(0)
    k_x, k_w, k_b = jax.random.split(key, 3)

    N, C, H, W = 2, 4, 16, 16
    x = jax.random.normal(k_x, (N, C, H, W), dtype=jnp.float32)

    # Deterministic parameter init (mimics PyTorch Conv2d default U(-bound, bound))
    bound = 1.0 / (C ** 0.5)
    weight = jax.random.uniform(k_w, (C,), minval=-bound, maxval=bound,
                                dtype=jnp.float32)
    bias = jax.random.uniform(k_b, (), minval=-bound, maxval=bound,
                              dtype=jnp.float32)

    out = pred_forward(x, weight, bias)
    out = jax.block_until_ready(out)

    ref = _reference(x, weight, bias)
    assert out.shape == (N, 1, H, W)
    assert jnp.allclose(out, ref, atol=1e-5, rtol=1e-5), "mismatch vs reference"

    print("KERNEL_OK")
</pallas_src>

<mosaic_0001>
module attributes {stable_mosaic.version = 11 : i64} {
  func.func @_pred_kernel(%arg0: i32, %arg1: i32, %arg2: memref<2x4x1x256xf32, #tpu.memory_space<vmem>>, %arg3: memref<4xf32, #tpu.memory_space<smem>>, %arg4: memref<1xf32, #tpu.memory_space<smem>>, %arg5: memref<2x1x256xf32, #tpu.memory_space<vmem>>) attributes {dimension_semantics = [#tpu.dimension_semantics<parallel>, #tpu.dimension_semantics<parallel>], iteration_bounds = array<i64: 1, 1>, scalar_prefetch = 0 : i64, scratch_operands = 0 : i64, tpu.core_type = #tpu.core_type<tc>, window_params = [{transform_indices = @transform_0, window_bounds = array<i64: 2, 4, 1, 256>}, {transform_indices = @transform_1, window_bounds = array<i64: 4>}, {transform_indices = @transform_2, window_bounds = array<i64: 1>}, {transform_indices = @transform_3, window_bounds = array<i64: 2, 1, 256>}]} {
    %c0 = arith.constant 0 : index
    %c0_0 = arith.constant 0 : index
    %c0_1 = arith.constant 0 : index
    %c0_2 = arith.constant 0 : index
    %0 = vector.load %arg2[%c0, %c0_0, %c0_1, %c0_2] : memref<2x4x1x256xf32, #tpu.memory_space<vmem>>, vector<2x1x1x256xf32>
    %1 = vector.shape_cast %0 : vector<2x1x1x256xf32> to vector<2x1x256xf32>
    %c0_3 = arith.constant 0 : index
    %2 = memref.load %arg3[%c0_3] : memref<4xf32, #tpu.memory_space<smem>>
    %3 = vector.broadcast %2 : f32 to vector<2x1x256xf32>
    %4 = arith.mulf %1, %3 : vector<2x1x256xf32>
    %c0_4 = arith.constant 0 : index
    %c1 = arith.constant 1 : index
    %c0_5 = arith.constant 0 : index
    %c0_6 = arith.constant 0 : index
    %5 = vector.load %arg2[%c0_4, %c1, %c0_5, %c0_6] : memref<2x4x1x256xf32, #tpu.memory_space<vmem>>, vector<2x1x1x256xf32>
    %6 = vector.shape_cast %5 : vector<2x1x1x256xf32> to vector<2x1x256xf32>
    %c1_7 = arith.constant 1 : index
    %7 = memref.load %arg3[%c1_7] : memref<4xf32, #tpu.memory_space<smem>>
    %8 = vector.broadcast %7 : f32 to vector<2x1x256xf32>
    %9 = arith.mulf %6, %8 : vector<2x1x256xf32>
    %10 = arith.addf %4, %9 : vector<2x1x256xf32>
    %c0_8 = arith.constant 0 : index
    %c2 = arith.constant 2 : index
    %c0_9 = arith.constant 0 : index
    %c0_10 = arith.constant 0 : index
    %11 = vector.load %arg2[%c0_8, %c2, %c0_9, %c0_10] : memref<2x4x1x256xf32, #tpu.memory_space<vmem>>, vector<2x1x1x256xf32>
    %12 = vector.shape_cast %11 : vector<2x1x1x256xf32> to vector<2x1x256xf32>
    %c2_11 = arith.constant 2 : index
    %13 = memref.load %arg3[%c2_11] : memref<4xf32, #tpu.memory_space<smem>>
    %14 = vector.broadcast %13 : f32 to vector<2x1x256xf32>
    %15 = arith.mulf %12, %14 : vector<2x1x256xf32>
    %16 = arith.addf %10, %15 : vector<2x1x256xf32>
    %c0_12 = arith.constant 0 : index
    %c3 = arith.constant 3 : index
    %c0_13 = arith.constant 0 : index
    %c0_14 = arith.constant 0 : index
    %17 = vector.load %arg2[%c0_12, %c3, %c0_13, %c0_14] : memref<2x4x1x256xf32, #tpu.memory_space<vmem>>, vector<2x1x1x256xf32>
    %18 = vector.shape_cast %17 : vector<2x1x1x256xf32> to vector<2x1x256xf32>
    %c3_15 = arith.constant 3 : index
    %19 = memref.load %arg3[%c3_15] : memref<4xf32, #tpu.memory_space<smem>>
    %20 = vector.broadcast %19 : f32 to vector<2x1x256xf32>
    %21 = arith.mulf %18, %20 : vector<2x1x256xf32>
    %22 = arith.addf %16, %21 : vector<2x1x256xf32>
    %c0_16 = arith.constant 0 : index
    %23 = memref.load %arg4[%c0_16] : memref<1xf32, #tpu.memory_space<smem>>
    %24 = vector.broadcast %23 : f32 to vector<2x1x256xf32>
    %25 = arith.addf %22, %24 : vector<2x1x256xf32>
    %26 = arith.negf %25 : vector<2x1x256xf32>
    %27 = math.exp %26 : vector<2x1x256xf32>
    %cst = arith.constant 1.000000e+00 : f32
    %28 = vector.broadcast %cst : f32 to vector<2x1x256xf32>
    %29 = arith.addf %28, %27 : vector<2x1x256xf32>
    %30 = arith.divf %28, %29 : vector<2x1x256xf32>
    %c0_17 = arith.constant 0 : index
    %c0_18 = arith.constant 0 : index
    %c0_19 = arith.constant 0 : index
    %31 = vector.load %arg5[%c0_17, %c0_18, %c0_19] : memref<2x1x256xf32, #tpu.memory_space<vmem>>, vector<2x1x256xf32>
    tpu.vector_store %arg5[%c0_17, %c0_18, %c0_19], %30 {strides = array<i32>} : memref<2x1x256xf32, #tpu.memory_space<vmem>>, vector<2x1x256xf32>,
    return
  }
  func.func @transform_0(%arg0: i32, %arg1: i32) -> (i32, i32, i32, i32) {
    %c0_i32 = arith.constant 0 : i32
    %c0_i32_0 = arith.constant 0 : i32
    %c0_i32_1 = arith.constant 0 : i32
    return %arg0, %c0_i32, %arg1, %c0_i32_0 : i32, i32, i32, i32
  }
  func.func @transform_1(%arg0: i32, %arg1: i32) -> i32 {
    %c0_i32 = arith.constant 0 : i32
    %c0_i32_0 = arith.constant 0 : i32
    return %c0_i32 : i32
  }
  func.func @transform_2(%arg0: i32, %arg1: i32) -> i32 {
    %c0_i32 = arith.constant 0 : i32
    %c0_i32_0 = arith.constant 0 : i32
    return %c0_i32 : i32
  }
  func.func @transform_3(%arg0: i32, %arg1: i32) -> (i32, i32, i32) {
    %c0_i32 = arith.constant 0 : i32
    %c0_i32_0 = arith.constant 0 : i32
    return %arg0, %arg1, %c0_i32 : i32, i32, i32
  }
}

</mosaic_0001>

<bundles_post_ra>
// kernel: tpu_custom_call.1
= control target key start
LH: loop header
LB: loop body
LE: loop exit
PB: predicated region body
PF: predicated region fallthrough
CT: control target
= control target key end

     0   :  { %9 = vsyncpa [#allocation4], 0  ;;  %s257_s0 = inlined_call_operand.hbm [shape: f32[2,4,1,256], index: 0, kind: input, shape index: {}]   ;;  %s258_s1 = inlined_call_operand.vmem [shape: f32[4], index: 1, kind: input, shape index: {}]   ;;  %s259_s2 = inlined_call_operand.<no memory space> [shape: f32[1], index: 2, kind: input, shape index: {}]   ;;  %s260_s3 = inlined_call_operand.hbm [shape: f32[2,1,256], index: 3, kind: output, shape index: {}]  }
   0x1   :  { %10 = vsyncpa [#allocation6], 0 }
   0x2   :  { %11 = vsyncpa [#allocation5], 0  ;;  %s196_s12 = smov [#allocation3]   ;;  %s30_s16 = sshll.u32 %s258_s1, 4  ;;  %s31_s16 = int_to_ptr.vmem [resolvable:$true] %s30_s16 }
   0x3   :  { %s17_s13 = sshll.u32 %s196_s12, 4  ;;  %s134_s19 = scalar_lea.hbm %s257_s0, 256  ;;  %s18_s13 = int_to_ptr.vmem [resolvable:$true] %s17_s13 }
   0x4   :  { %p135_p0 = scmp.ne.s32.totalorder %s257_s0, %s134_s19  ;;  %p138_p1 = scmp.lt.u32.totalorder %s134_s19, %s257_s0 }
   0x6   :  { %p140_p2 = pnand %p138_p1, %p135_p0 }
   0x8   :  { %143 = shalt.err (!%p140_p2)
}
   0x9   :  { %s144_s24 = scalar_lea.vmem %s18_s13, 256  ;;  %p149_p4 = scmp.lt.s32.totalorder %s18_s13, %s18_s13 }
   0xa   :  { %p145_p3 = scmp.ne.s32.totalorder %s18_s13, %s144_s24  ;;  %p150_p5 = scmp.lt.s32.totalorder %s144_s24, %s144_s24 }
   0xc   :  { %p151_p6 = por %p150_p5, %p149_p4 }
   0xe   :  { %p152_p7 = pnand %p151_p6, %p145_p3 }
  0x10   :  { %155 = shalt.err (!%p152_p7)
}
  0x11   :  { %s197_s1 = smov 32   ;;  %s198_s25 = smov 2  }
  0x12   :  { %23 = dma.hbm_to_vmem [thread:$0]  %s257_s0, 256, %s18_s13, [#allocation4], %s197_s1, %s197_s1, %s198_s25  }
  0x13   :  { %s156_s28 = scalar_lea.vmem %s31_s16, 16  ;;  %p161_p9 = scmp.lt.s32.totalorder %s31_s16, %s31_s16 }
  0x14   :  { %p157_p8 = scmp.ne.s32.totalorder %s31_s16, %s156_s28  ;;  %p162_p10 = scmp.lt.s32.totalorder %s156_s28, %s156_s28 }
  0x16   :  { %p163_p11 = por %p162_p10, %p161_p9 }
  0x18   :  { %p164_p12 = pnand %p163_p11, %p157_p8 }
  0x1a   :  { %167 = shalt.err (!%p164_p12)
}
  0x1b   :  { %s199_s29 = smov [#allocation7]  }
  0x1c   :  { %33 = dma.vmem_to_smem %s31_s16, 16, %s199_s29, [#allocation6]  }
  0x1d   :  { %190 = dma.done.wait [#allocation4], 256  }
  0x1e   :  { %191 = vsyncadd [#allocation4], 4294967040 }
  0x1f   :  { %192 = dma.done.wait [#allocation6], 16  }
  0x20   :  { %193 = vsyncadd [#allocation6], 4294967280 }
  0x21   :  { %42 = sfence }
  0x22   :  { %s45_s30 = sld [smem:[#allocation7]]  ;;  %s116_s4 = sld [smem:[#allocation7 + $0x1]]  ;;  %v43_v0 = vld [vmem:[#allocation3] sm:$0x3]  ;;  %v44_v1 = vld [vmem:[#allocation3 + $0x8] sm:$0x3]  ;;  %v77_v24 = vstv %s259_s2  ;;  %v92_v35 = vlaneseq }
  0x23   :  { %s117_s5 = sld [smem:[#allocation7 + $0x2]]  ;;  %s118_s6 = sld [smem:[#allocation7 + $0x3]]  ;;  %v50_v2 = vld [vmem:[#allocation3 + $0x2] sm:$0x3]  ;;  %v59_v3 = vld [vmem:[#allocation3 + $0x4] sm:$0x3] }
  0x24   :  { %v51_v4 = vld [vmem:[#allocation3 + $0xa] sm:$0x3]  ;;  %v60_v6 = vld [vmem:[#allocation3 + $0xc] sm:$0x3]  ;;  %v68_v10 = vld [vmem:[#allocation3 + $0x6] sm:$0x3] }
  0x25   :  { %v69_v12 = vld [vmem:[#allocation3 + $0xe] sm:$0x3]  ;;  %s200_s8 = smov [#allocation8]   ;;  %vm94_vm0 = vcmp.lt.s32.totalorder %v92_v35, 256 }
  0x26   :  { %s103_s9 = sshll.u32 %s200_s8, 4  ;;  %s104_s9 = int_to_ptr.vmem [resolvable:$true] %s103_s9 }
  0x27   :  { %s168_s2 = scalar_lea.vmem %s104_s9, 64  ;;  %p173_p0 = scmp.lt.s32.totalorder %s104_s9, %s104_s9 }
  0x28   :  { %v46_v5 = vstv %s45_s30  ;;  %v53_v8 = vstv %s116_s4  ;;  %p169_p13 = scmp.ne.s32.totalorder %s104_s9, %s168_s2  ;;  %p174_p1 = scmp.lt.s32.totalorder %s168_s2, %s168_s2 }
  0x29   :  { %v47_v7 = vmul.f32 %v46_v5, %v43_v0  ;;  %v62_v9 = vstv %s117_s5  ;;  %v48_v11 = vmul.f32 %v46_v5, %v44_v1  ;;  %v54_v13 = vmul.f32 %v53_v8, %v50_v2 }
  0x2a   :  { %v63_v14 = vmul.f32 %v62_v9, %v59_v3  ;;  %v71_v15 = vstv %s118_s6  ;;  %v55_v16 = vmul.f32 %v53_v8, %v51_v4  ;;  %v64_v17 = vmul.f32 %v62_v9, %v60_v6  ;;  %p175_p2 = por %p174_p1, %p173_p0 }
  0x2b   :  { %v56_v18 = vadd.f32 %v54_v13, %v47_v7  ;;  %v72_v19 = vmul.f32 %v71_v15, %v68_v10  ;;  %v73_v21 = vmul.f32 %v71_v15, %v69_v12 }
  0x2c   :  { %v57_v20 = vadd.f32 %v55_v16, %v48_v11  ;;  %p176_p3 = pnand %p175_p2, %p169_p13 }
  0x2d   :  { %v65_v22 = vadd.f32 %v63_v14, %v56_v18 }
  0x2e   :  { %v66_v23 = vadd.f32 %v64_v17, %v57_v20 }
  0x2f   :  { %v74_v25 = vadd.f32 %v72_v19, %v65_v22 }
  0x30   :  { %v75_v26 = vadd.f32 %v73_v21, %v66_v23 }
  0x31   :  { %v78_v27 = vadd.f32 %v77_v24, %v74_v25 }
  0x32   :  { %v79_v28 = vadd.f32 %v77_v24, %v75_v26 }
  0x33   :  { %v119_v29 = vmul.f32 -1.442695, %v78_v27 }
  0x34   :  { %v120_v30 = vmul.f32 -1.442695, %v79_v28 }
  0x35   :  { %126 = vpow2.f32 %v119_v29 }
  0x36   :  { %128 = vpow2.f32 %v120_v30 }
  0x3f   :  { %v127_v31 = vpop.eup %126 }
  0x40   :  { %v129_v32 = vpop.eup %128  ;;  %v86_v33 = vadd.f32 1.0, %v127_v31 }
  0x41   :  { %v87_v34 = vadd.f32 1.0, %v129_v32 }
  0x42   :  { %130 = vrcp.f32 %v86_v33 }
  0x43   :  { %132 = vrcp.f32 %v87_v34 }
  0x4c   :  { %v131_v36 = vpop.eup %130 }
  0x4d   :  { %v133_v37 = vpop.eup %132  ;;  %96 = vst.msk [vmem:[#allocation8] sm:$0x3] %vm94_vm0, %v131_v36 }
  0x4e   :  { %97 = vst.msk [vmem:[#allocation8 + $0x2] sm:$0x3] %vm94_vm0, %v133_v37 }
  0x4f   :  { %179 = shalt.err (!%p176_p3)
}
  0x50   :  { %s180_s12 = scalar_lea.hbm %s260_s3, 64 }
  0x51   :  { %p181_p4 = scmp.ne.s32.totalorder %s260_s3, %s180_s12  ;;  %p184_p5 = scmp.lt.u32.totalorder %s180_s12, %s260_s3 }
  0x53   :  { %p186_p6 = pnand %p184_p5, %p181_p4 }
  0x55   :  { %189 = shalt.err (!%p186_p6)
}
  0x56   :  { %109 = dma.vmem_to_hbm [thread:$0]  %s104_s9, 64, %s260_s3, [#allocation5], %s197_s1, %s197_s1, %s198_s25  }
  0x57   :  { %194 = dma.done.wait [#allocation5], 64  }
  0x58   :  { %195 = vsyncadd [#allocation5], 4294967232 }
  0x59   :  { %113 = vsyncpa [#allocation4], 1 }
  0x5a   :  { %114 = vsyncpa [#allocation5], 1 }
  0x5b   :  { %115 = vsyncpa [#allocation6], 1 }

</bundles_post_ra>
